<compile_context>
chip_gen: v7x
topology: tpu7x:2x2x1
jax: 0.10.0
libtpu: 0.0.40
codegen_flags: <defaults>
</compile_context>

<pallas_src>
import functools
from collections import namedtuple

import jax
import jax.numpy as jnp
from jax.experimental import pallas as pl
from jax.experimental.pallas import tpu as pltpu

_LANE = 128

# Test / tuning knobs (the self-test forces the K-tiled path at a small size).
_FORCE_KTILE = False
_FORCE_TK = None


def _round_up(v, m):
    return (v + m - 1) // m * m


def _sublane(dtype):
    # Minimum sublane multiple per element size (f32: 8, bf16: 16, int8/fp8: 32).
    return {4: 8, 2: 16, 1: 32}.get(jnp.dtype(dtype).itemsize, 8)


@functools.lru_cache(maxsize=None)
def _vmem_budget_bytes():
    """Generation-aware VMEM budget (~75% of physical capacity, capped at 100 MiB)."""
    cap = None
    try:
        cap = getattr(pltpu.get_tpu_info(), "vmem_capacity_bytes", None)
    except Exception:
        cap = None
    if not cap:
        cap = 64 * 1024 * 1024  # conservative fallback (v7x per-core VMEM)
    return min(int(cap) * 3 // 4, 100 * 1024 * 1024)


@functools.lru_cache(maxsize=None)
def _single_buffer_supported():
    """Probe once whether pipeline_mode=pl.Buffered(1) works on this jax/Mosaic."""
    try:
        def _k(x_ref, o_ref):
            o_ref[...] = x_ref[...] + 1.0

        x = jnp.arange(16 * _LANE, dtype=jnp.float32).reshape(16, _LANE)
        out = pl.pallas_call(
            _k,
            out_shape=jax.ShapeDtypeStruct((16, _LANE), jnp.float32),
            grid=(2,),
            in_specs=[pl.BlockSpec((8, _LANE), lambda i: (i, 0),
                                   pipeline_mode=pl.Buffered(1))],
            out_specs=pl.BlockSpec((8, _LANE), lambda i: (i, 0)),
        )(x)
        return bool(jnp.allclose(jax.block_until_ready(out), x + 1.0))
    except Exception:
        return False


def _bspec(shape, index_map, single_buffer=False):
    if single_buffer:
        return pl.BlockSpec(shape, index_map, pipeline_mode=pl.Buffered(1))
    return pl.BlockSpec(shape, index_map)


def _pick_tk(Dp):
    for tk in (512, 384, 256, 128):
        if Dp % tk == 0:
            return tk
    return _LANE


Plan = namedtuple("Plan", "Bp Dp tm tk batch_outer single_buf vmem_limit")


def _plan(B, D, NB, x_dtype, param_dtype):
    Dp = _round_up(D, _LANE)
    item_x = jnp.dtype(x_dtype).itemsize
    item_w = jnp.dtype(param_dtype).itemsize
    budget = _vmem_budget_bytes()
    single_buf = _single_buffer_supported()

    # Can one block's full weights stay resident in VMEM with room for activations?
    full_w = (2 * Dp * Dp + 2 * Dp) * item_w
    w_resident = full_w * (1 if single_buf else 2)
    use_ktile = _FORCE_KTILE or (w_resident > budget // 2)
    if use_ktile:
        tk = _FORCE_TK if _FORCE_TK else _pick_tk(Dp)
        w_resident = 2 * (2 * Dp * tk + Dp + tk) * item_w   # double-buffered K tiles
    else:
        tk = 0

    # Batch tile: largest aligned tile that fits the remaining VMEM, minimizing
    # padding waste for the actual batch size.
    per_row = Dp * (4 * item_x + 4)        # x + out (double buffered) + f32/act scratch
    avail = budget - w_resident - (2 << 20)
    max_tm = 8 if avail <= 0 else max(8, min(1024, avail // per_row))

    sub = _sublane(x_dtype)
    cands = {c for c in (1024, 512, 256, 128, 64, 32, 16, 8)
             if c % sub == 0 and c <= max_tm}
    b_aligned = _round_up(B, sub)
    if b_aligned <= max_tm:
        cands.add(b_aligned)
    if not cands:
        cands.add(sub)
    best_tm, best_waste = None, None
    for c in sorted(cands):
        waste = _round_up(B, c) - B
        if best_waste is None or waste < best_waste or (waste == best_waste and c > best_tm):
            best_tm, best_waste = c, waste
    tm = best_tm
    Bp = _round_up(B, tm)

    # Grid order for the fused multi kernel: re-read whichever operand is cheaper.
    extra_x = (NB - 1) * Bp * Dp * item_x                    # x re-reads (block axis outer)
    extra_w = (Bp // tm - 1) * NB * 2 * Dp * Dp * item_w     # weight re-reads (batch outer)
    batch_outer = extra_x > extra_w

    return Plan(Bp, Dp, tm, tk, batch_outer, single_buf, budget)


# ----------------------------- kernels -----------------------------------------


def _mlp_kernel(x_ref, w1_ref, b1_ref, w2_ref, b2_ref, o_ref):
    # Linear -> ReLU -> Linear on one (tm, Dp) batch tile; full weights resident.
    h = jnp.dot(x_ref[...], w1_ref[...], preferred_element_type=jnp.float32)
    h = jnp.maximum(h + b1_ref[...].astype(jnp.float32), 0.0)
    y = jnp.dot(h.astype(w2_ref.dtype), w2_ref[...], preferred_element_type=jnp.float32)
    o_ref[...] = (y + b2_ref[...].astype(jnp.float32)).astype(o_ref.dtype)


def _mlp_ktile_kernel(x_ref, w1_ref, b1_ref, w2_ref, b2_ref, o_ref, acc_ref):
    # Hidden dim tiled on the innermost ('arbitrary') grid axis:
    #   h_k = relu(x @ W1[:, k] + b1[k]);  acc += h_k @ W2[k, :];  finalize with +b2.
    k = pl.program_id(2)

    @pl.when(k == 0)
    def _():
        acc_ref[...] = jnp.zeros_like(acc_ref)

    h = jnp.dot(x_ref[...], w1_ref[...], preferred_element_type=jnp.float32)
    h = jnp.maximum(h + b1_ref[...].astype(jnp.float32), 0.0)
    acc_ref[...] += jnp.dot(h.astype(w2_ref.dtype), w2_ref[...],
                            preferred_element_type=jnp.float32)

    @pl.when(k == pl.num_programs(2) - 1)
    def _():
        o_ref[...] = (acc_ref[...] + b2_ref[...].astype(jnp.float32)).astype(o_ref.dtype)


def _stacked_mlp_kernel(x_ref, w1_ref, b1_ref, w2_ref, b2_ref, o_ref, act_ref):
    # Chained MLPs: activation carried across the innermost (sequential) block axis
    # in VMEM scratch, in the output dtype -- no HBM round trip between blocks.
    @pl.when(pl.program_id(1) == 0)
    def _():
        act_ref[...] = x_ref[...]

    h = jnp.dot(act_ref[...], w1_ref[...], preferred_element_type=jnp.float32)
    h = jnp.maximum(h + b1_ref[...].astype(jnp.float32), 0.0)
    y = jnp.dot(h.astype(w2_ref.dtype), w2_ref[...], preferred_element_type=jnp.float32)
    y = (y + b2_ref[...].astype(jnp.float32)).astype(o_ref.dtype)
    act_ref[...] = y
    o_ref[...] = y


# ----------------------------- builders ----------------------------------------


@functools.lru_cache(maxsize=None)
def _build_multi_fn(NB, B, D, Bp, Dp, tm, tk, batch_outer, x_dtype_name,
                    vmem_limit, single_buf):
    x_dtype = jnp.dtype(x_dtype_name)
    nbt = Bp // tm

    if tk:
        # K-tiled weights for large embed_dim (v7x 64 MiB VMEM): weights streamed
        # in (Dp, tk)/(tk, Dp) slices, f32 accumulator scratch, output at last k.
        grid = (NB, nbt, Dp // tk)
        kernel = _mlp_ktile_kernel
        in_specs = [
            _bspec((tm, Dp), lambda b, i, k: (i, 0), single_buf),
            _bspec((None, Dp, tk), lambda b, i, k: (b, 0, k)),
            _bspec((None, 1, tk), lambda b, i, k: (b, 0, k)),
            _bspec((None, tk, Dp), lambda b, i, k: (b, k, 0)),
            _bspec((None, 1, Dp), lambda b, i, k: (b, 0, 0), single_buf),
        ]
        out_specs = pl.BlockSpec((None, tm, Dp), lambda b, i, k: (b, i, 0))
        scratch = (pltpu.VMEM((tm, Dp), jnp.float32),)
        semantics = ("parallel", "parallel", "arbitrary")
    elif batch_outer:
        # Batch tile outer / block axis inner: x stays resident per batch tile.
        grid = (nbt, NB)
        kernel = _mlp_kernel
        in_specs = [
            _bspec((tm, Dp), lambda i, b: (i, 0), single_buf and NB >= 2),
            _bspec((None, Dp, Dp), lambda i, b: (b, 0, 0)),
            _bspec((None, 1, Dp), lambda i, b: (b, 0, 0)),
            _bspec((None, Dp, Dp), lambda i, b: (b, 0, 0)),
            _bspec((None, 1, Dp), lambda i, b: (b, 0, 0)),
        ]
        out_specs = pl.BlockSpec((None, tm, Dp), lambda i, b: (b, i, 0))
        scratch = ()
        semantics = ("parallel", "parallel")
    else:
        # Block axis outer / batch inner: per-block weights resident across batch tiles.
        grid = (NB, nbt)
        kernel = _mlp_kernel
        wsb = single_buf and (NB == 1 or nbt >= 2)
        in_specs = [
            _bspec((tm, Dp), lambda b, i: (i, 0)),
            _bspec((None, Dp, Dp), lambda b, i: (b, 0, 0), wsb),
            _bspec((None, 1, Dp), lambda b, i: (b, 0, 0), wsb),
            _bspec((None, Dp, Dp), lambda b, i: (b, 0, 0), wsb),
            _bspec((None, 1, Dp), lambda b, i: (b, 0, 0), wsb),
        ]
        out_specs = pl.BlockSpec((None, tm, Dp), lambda b, i: (b, i, 0))
        scratch = ()
        semantics = ("parallel", "parallel")

    pc = pl.pallas_call(
        kernel,
        out_shape=jax.ShapeDtypeStruct((NB, Bp, Dp), x_dtype),
        grid=grid,
        in_specs=in_specs,
        out_specs=out_specs,
        scratch_shapes=scratch,
        compiler_params=pltpu.CompilerParams(
            dimension_semantics=semantics, vmem_limit_bytes=vmem_limit),
    )

    pad_b, pad_d = Bp - B, Dp - D

    def fn(x, w1p, b1p, w2p, b2p):
        if pad_b or pad_d:
            x = jnp.pad(x, ((0, pad_b), (0, pad_d)))
        out = pc(x, w1p, b1p, w2p, b2p)
        if pad_b or pad_d:
            return tuple(out[k, :B, :D] for k in range(NB))
        return tuple(out[k] for k in range(NB))

    return jax.jit(fn)


@functools.lru_cache(maxsize=None)
def _build_stacked_fn(NB, B, D, Bp, Dp, tm, x_dtype_name, vmem_limit, single_buf):
    x_dtype = jnp.dtype(x_dtype_name)
    nbt = Bp // tm

    in_specs = [
        _bspec((tm, Dp), lambda i, b: (i, 0), single_buf and NB >= 2),
        _bspec((None, Dp, Dp), lambda i, b: (b, 0, 0)),
        _bspec((None, 1, Dp), lambda i, b: (b, 0, 0)),
        _bspec((None, Dp, Dp), lambda i, b: (b, 0, 0)),
        _bspec((None, 1, Dp), lambda i, b: (b, 0, 0)),
    ]
    pc = pl.pallas_call(
        _stacked_mlp_kernel,
        out_shape=jax.ShapeDtypeStruct((NB, Bp, Dp), x_dtype),
        grid=(nbt, NB),                      # block axis last => innermost, sequential chain
        in_specs=in_specs,
        out_specs=pl.BlockSpec((None, tm, Dp), lambda i, b: (b, i, 0)),
        scratch_shapes=(pltpu.VMEM((tm, Dp), x_dtype),),
        compiler_params=pltpu.CompilerParams(
            dimension_semantics=("parallel", "arbitrary"),
            vmem_limit_bytes=vmem_limit),
    )

    pad_b, pad_d = Bp - B, Dp - D

    def fn(x, w1p, b1p, w2p, b2p):
        if pad_b or pad_d:
            x = jnp.pad(x, ((0, pad_b), (0, pad_d)))
        out = pc(x, w1p, b1p, w2p, b2p)
        if pad_b or pad_d:
            return tuple(out[k, :B, :D] for k in range(NB))
        return tuple(out[k] for k in range(NB))

    return jax.jit(fn)


def _get_multi_fn(B, D, NB, x_dtype, param_dtype):
    p = _plan(B, D, NB, x_dtype, param_dtype)
    return _build_multi_fn(NB, B, D, p.Bp, p.Dp, p.tm, p.tk, p.batch_outer,
                           jnp.dtype(x_dtype).name, p.vmem_limit, p.single_buf)


# ----------------------------- module -------------------------------------------


def _init_linear(k, d_in, d_out, dtype):
    # Mimics nn.Linear's U(-1/sqrt(fan_in), 1/sqrt(fan_in)) init.
    kw, kb = jax.random.split(k)
    bound = 1.0 / (d_in ** 0.5)
    w = jax.random.uniform(kw, (d_in, d_out), jnp.float32, -bound, bound)
    b = jax.random.uniform(kb, (d_out,), jnp.float32, -bound, bound)
    return w.astype(dtype), b.astype(dtype)


def _pad_stacked(w1s, b1s, w2s, b2s, D, Dp):
    pw = ((0, 0), (0, Dp - D), (0, Dp - D))
    pb = ((0, 0), (0, 0), (0, Dp - D))
    return (jnp.pad(w1s, pw), jnp.pad(b1s[:, None, :], pb),
            jnp.pad(w2s, pw), jnp.pad(b2s[:, None, :], pb))


class NormflowCondPrepPallas:
    """JAX/Pallas port of NormflowCondPrep."""

    def __init__(self, embed_dim, num_blocks=5, mode="dense_embed", key=None,
                 param_dtype=jnp.float32):
        self.embed_dim = embed_dim
        self.num_blocks = num_blocks
        self.mode = mode
        self._param_dtype = jnp.dtype(param_dtype)
        if key is None:
            key = jax.random.PRNGKey(0)

        D = embed_dim
        Dp = _round_up(D, _LANE)

        if mode == "dense_embed":
            n_mlps = 1
        elif mode in ("dense_embed_multi", "dense_embed_multi_stacked"):
            n_mlps = num_blocks
        else:
            self.w1s = None
            return

        keys = jax.random.split(key, 2 * n_mlps)
        p1 = [_init_linear(keys[2 * i], D, D, param_dtype) for i in range(n_mlps)]
        p2 = [_init_linear(keys[2 * i + 1], D, D, param_dtype) for i in range(n_mlps)]
        self.w1s = jnp.stack([w for w, _ in p1])
        self.b1s = jnp.stack([b for _, b in p1])
        self.w2s = jnp.stack([w for w, _ in p2])
        self.b2s = jnp.stack([b for _, b in p2])
        if mode == "dense_embed":
            self.params = ((self.w1s[0], self.b1s[0]), (self.w2s[0], self.b2s[0]))

        # Pad weights/biases ONCE at init (no per-forward weight-padding HBM traffic).
        self._w1p, self._b1p, self._w2p, self._b2p = _pad_stacked(
            self.w1s, self.b1s, self.w2s, self.b2s, D, Dp)

    def __call__(self, x):
        mode = self.mode
        if mode == "dense":
            return [x for _ in range(self.num_blocks)]
        if mode not in ("dense_embed", "dense_embed_multi", "dense_embed_multi_stacked"):
            return [x]

        orig_shape = x.shape
        if x.ndim != 2:
            x = x.reshape(-1, orig_shape[-1])
        B, D = x.shape

        def unflatten(o):
            return o.reshape(orig_shape) if len(orig_shape) != 2 else o

        if mode == "dense_embed":
            fn = _get_multi_fn(B, D, 1, x.dtype, self._param_dtype)
            y = unflatten(fn(x, self._w1p, self._b1p, self._w2p, self._b2p)[0])
            return [y for _ in range(self.num_blocks)]

        if mode == "dense_embed_multi":
            fn = _get_multi_fn(B, D, self.num_blocks, x.dtype, self._param_dtype)
            return [unflatten(o)
                    for o in fn(x, self._w1p, self._b1p, self._w2p, self._b2p)]

        # dense_embed_multi_stacked
        plan = _plan(B, D, self.num_blocks, x.dtype, self._param_dtype)
        if plan.tk:
            # TODO(synk): fuse a K-tiled stacked kernel; for very large embed_dim we
            # chain the per-block K-tiled kernel (activation round-trips HBM).
            fn = _get_multi_fn(B, D, 1, x.dtype, self._param_dtype)
            outs, cur = [], x
            for k in range(self.num_blocks):
                cur = fn(cur, self._w1p[k:k + 1], self._b1p[k:k + 1],
                         self._w2p[k:k + 1], self._b2p[k:k + 1])[0]
                outs.append(unflatten(cur))
            return outs
        fn = _build_stacked_fn(self.num_blocks, B, D, plan.Bp, plan.Dp, plan.tm,
                               jnp.dtype(x.dtype).name, plan.vmem_limit,
                               plan.single_buf)
        return [unflatten(o)
                for o in fn(x, self._w1p, self._b1p, self._w2p, self._b2p)]


if __name__ == "__main__":
    key = jax.random.PRNGKey(0)
    k_x, k_p1, k_p2, k_p3, k_p4, k_x2 = jax.random.split(key, 6)

    batch, embed_dim, num_blocks = 8, 32, 5
    x = jax.random.normal(k_x, (batch, embed_dim), jnp.float32)

    def ref_mlp(xv, w1, b1, w2, b2):
        return jnp.maximum(xv @ w1 + b1, 0.0) @ w2 + b2

    # --- mode='dense_embed' (default), f32 ---
    model = NormflowCondPrepPallas(embed_dim, num_blocks=num_blocks,
                                   mode="dense_embed", key=k_p1)
    outs = [jax.block_until_ready(o) for o in model(x)]
    (w1, b1), (w2, b2) = model.params
    ref = ref_mlp(x, w1, b1, w2, b2)
    assert len(outs) == num_blocks
    for o in outs:
        assert o.shape == (batch, embed_dim)
        assert jnp.allclose(o, ref, atol=1e-4, rtol=1e-4)

    # --- mode='dense_embed', bf16 params/activations (native MXU dtype path) ---
    model_bf = NormflowCondPrepPallas(embed_dim, num_blocks=num_blocks,
                                      mode="dense_embed", key=k_p1,
                                      param_dtype=jnp.bfloat16)
    x_bf = x.astype(jnp.bfloat16)
    y_bf = jax.block_until_ready(model_bf(x_bf)[0])
    (w1b, b1b), (w2b, b2b) = model_bf.params
    ref_bf = ref_mlp(x_bf.astype(jnp.float32), w1b.astype(jnp.float32),
                     b1b.astype(jnp.float32), w2b.astype(jnp.float32),
                     b2b.astype(jnp.float32))
    assert jnp.allclose(y_bf.astype(jnp.float32), ref_bf, atol=5e-2, rtol=5e-2)

    # --- mode='dense_embed_multi' (one fused kernel over all blocks) ---
    model_m = NormflowCondPrepPallas(embed_dim, num_blocks=num_blocks,
                                     mode="dense_embed_multi", key=k_p2)
    outs_m = [jax.block_until_ready(o) for o in model_m(x)]
    assert len(outs_m) == num_blocks
    for k in range(num_blocks):
        ref_k = ref_mlp(x, model_m.w1s[k], model_m.b1s[k],
                        model_m.w2s[k], model_m.b2s[k])
        assert jnp.allclose(outs_m[k], ref_k, atol=1e-4, rtol=1e-4)

    # --- mode='dense_embed_multi_stacked' (chained, activation kept in VMEM) ---
    model_s = NormflowCondPrepPallas(embed_dim, num_blocks=num_blocks,
                                     mode="dense_embed_multi_stacked", key=k_p3)
    outs_s = [jax.block_until_ready(o) for o in model_s(x)]
    assert len(outs_s) == num_blocks
    xr = x
    for k in range(num_blocks):
        xr = ref_mlp(xr, model_s.w1s[k], model_s.b1s[k],
                     model_s.w2s[k], model_s.b2s[k])
        assert jnp.allclose(outs_s[k], xr, atol=1e-3, rtol=1e-3)

    # --- K-tiled weight path (forced small so the large-embed_dim kernel is tested) ---
    _FORCE_KTILE, _FORCE_TK = True, 128
    try:
        d_big, b_big, nb_big = 256, 16, 2
        x2 = jax.random.normal(k_x2, (b_big, d_big), jnp.float32)

        model_k = NormflowCondPrepPallas(d_big, num_blocks=nb_big,
                                         mode="dense_embed_multi", key=k_p4)
        outs_k = [jax.block_until_ready(o) for o in model_k(x2)]
        for k in range(nb_big):
            ref_k = ref_mlp(x2, model_k.w1s[k], model_k.b1s[k],
                            model_k.w2s[k], model_k.b2s[k])
            assert jnp.allclose(outs_k[k], ref_k, atol=1e-4, rtol=1e-4)

        model_sk = NormflowCondPrepPallas(d_big, num_blocks=nb_big,
                                          mode="dense_embed_multi_stacked", key=k_p4)
        outs_sk = [jax.block_until_ready(o) for o in model_sk(x2)]
        xr = x2
        for k in range(nb_big):
            xr = ref_mlp(xr, model_sk.w1s[k], model_sk.b1s[k],
                         model_sk.w2s[k], model_sk.b2s[k])
            assert jnp.allclose(outs_sk[k], xr, atol=1e-3, rtol=1e-3)
    finally:
        _FORCE_KTILE, _FORCE_TK = False, None

    print("KERNEL_OK")
</pallas_src>

<mosaic_0001>
module attributes {stable_mosaic.version = 11 : i64} {
  func.func @_k(%arg0: i32, %arg1: memref<8x128xf32, #tpu.memory_space<vmem>>, %arg2: memref<8x128xf32, #tpu.memory_space<vmem>>) attributes {dimension_semantics = [#tpu.dimension_semantics<arbitrary>], iteration_bounds = array<i64: 2>, scalar_prefetch = 0 : i64, scratch_operands = 0 : i64, tpu.core_type = #tpu.core_type<tc>, window_params = [{pipeline_mode = #tpu.pipeline_mode<synchronous>, transform_indices = @transform_0, window_bounds = array<i64: 8, 128>}, {transform_indices = @transform_1, window_bounds = array<i64: 8, 128>}]} {
    %c0 = arith.constant 0 : index
    %c0_0 = arith.constant 0 : index
    %0 = vector.load %arg1[%c0, %c0_0] : memref<8x128xf32, #tpu.memory_space<vmem>>, vector<8x128xf32>
    %cst = arith.constant 1.000000e+00 : f32
    %1 = vector.broadcast %cst : f32 to vector<8x128xf32>
    %2 = arith.addf %0, %1 : vector<8x128xf32>
    %c0_1 = arith.constant 0 : index
    %c0_2 = arith.constant 0 : index
    %3 = vector.load %arg2[%c0_1, %c0_2] : memref<8x128xf32, #tpu.memory_space<vmem>>, vector<8x128xf32>
    tpu.vector_store %arg2[%c0_1, %c0_2], %2 {strides = array<i32>} : memref<8x128xf32, #tpu.memory_space<vmem>>, vector<8x128xf32>,
    return
  }
  func.func @transform_0(%arg0: i32) -> (i32, i32) {
    %c0_i32 = arith.constant 0 : i32
    %c0_i32_0 = arith.constant 0 : i32
    return %arg0, %c0_i32 : i32, i32
  }
  func.func @transform_1(%arg0: i32) -> (i32, i32) {
    %c0_i32 = arith.constant 0 : i32
    %c0_i32_0 = arith.constant 0 : i32
    return %arg0, %c0_i32 : i32, i32
  }
}

module attributes {stable_mosaic.version = 11 : i64} {
  func.func @_mlp_kernel(%arg0: i32, %arg1: i32, %arg2: memref<8x128xf32, #tpu.memory_space<vmem>>, %arg3: memref<1x128x128xf32, #tpu.memory_space<vmem>>, %arg4: memref<1x1x128xf32, #tpu.memory_space<vmem>>, %arg5: memref<1x128x128xf32, #tpu.memory_space<vmem>>, %arg6: memref<1x1x128xf32, #tpu.memory_space<vmem>>, %arg7: memref<1x8x128xf32, #tpu.memory_space<vmem>>) attributes {dimension_semantics = [#tpu.dimension_semantics<parallel>, #tpu.dimension_semantics<parallel>], iteration_bounds = array<i64: 1, 1>, scalar_prefetch = 0 : i64, scratch_operands = 0 : i64, tpu.core_type = #tpu.core_type<tc>, window_params = [{transform_indices = @transform_0, window_bounds = array<i64: 8, 128>}, {transform_indices = @transform_1, window_bounds = array<i64: 1, 128, 128>}, {transform_indices = @transform_2, window_bounds = array<i64: 1, 1, 128>}, {transform_indices = @transform_3, window_bounds = array<i64: 1, 128, 128>}, {transform_indices = @transform_4, window_bounds = array<i64: 1, 1, 128>}, {transform_indices = @transform_5, window_bounds = array<i64: 1, 8, 128>}]} {
    %c0 = arith.constant 0 : index
    %c0_0 = arith.constant 0 : index
    %0 = vector.load %arg2[%c0, %c0_0] : memref<8x128xf32, #tpu.memory_space<vmem>>, vector<8x128xf32>
    %c0_1 = arith.constant 0 : index
    %c0_2 = arith.constant 0 : index
    %c0_3 = arith.constant 0 : index
    %1 = vector.load %arg3[%c0_1, %c0_2, %c0_3] : memref<1x128x128xf32, #tpu.memory_space<vmem>>, vector<1x128x128xf32>
    %2 = vector.shape_cast %1 : vector<1x128x128xf32> to vector<128x128xf32>
    %cst = arith.constant dense<0.000000e+00> : vector<8x128xf32>
    %3 = tpu.matmul %0, %2, %cst {dimension_numbers = #tpu.dot_dimension_numbers<[1], [0], [0], [1], [0, 0, 1, 1], [], []>} : vector<8x128xf32>, vector<128x128xf32>, vector<8x128xf32> -> vector<8x128xf32>
    %c0_4 = arith.constant 0 : index
    %c0_5 = arith.constant 0 : index
    %c0_6 = arith.constant 0 : index
    %4 = vector.load %arg4[%c0_4, %c0_5, %c0_6] : memref<1x1x128xf32, #tpu.memory_space<vmem>>, vector<1x1x128xf32>
    %5 = vector.shape_cast %4 : vector<1x1x128xf32> to vector<1x128xf32>
    %6 = vector.broadcast %5 : vector<1x128xf32> to vector<8x128xf32>
    %7 = arith.addf %3, %6 : vector<8x128xf32>
    %cst_7 = arith.constant 0.000000e+00 : f32
    %8 = vector.broadcast %cst_7 : f32 to vector<8x128xf32>
    %9 = arith.maximumf %7, %8 : vector<8x128xf32>
    %c0_8 = arith.constant 0 : index
    %c0_9 = arith.constant 0 : index
    %c0_10 = arith.constant 0 : index
    %10 = vector.load %arg5[%c0_8, %c0_9, %c0_10] : memref<1x128x128xf32, #tpu.memory_space<vmem>>, vector<1x128x128xf32>
    %11 = vector.shape_cast %10 : vector<1x128x128xf32> to vector<128x128xf32>
    %cst_11 = arith.constant dense<0.000000e+00> : vector<8x128xf32>
    %12 = tpu.matmul %9, %11, %cst_11 {dimension_numbers = #tpu.dot_dimension_numbers<[1], [0], [0], [1], [0, 0, 1, 1], [], []>} : vector<8x128xf32>, vector<128x128xf32>, vector<8x128xf32> -> vector<8x128xf32>
    %c0_12 = arith.constant 0 : index
    %c0_13 = arith.constant 0 : index
    %c0_14 = arith.constant 0 : index
    %13 = vector.load %arg6[%c0_12, %c0_13, %c0_14] : memref<1x1x128xf32, #tpu.memory_space<vmem>>, vector<1x1x128xf32>
    %14 = vector.shape_cast %13 : vector<1x1x128xf32> to vector<1x128xf32>
    %15 = vector.broadcast %14 : vector<1x128xf32> to vector<8x128xf32>
    %16 = arith.addf %12, %15 : vector<8x128xf32>
    %c0_15 = arith.constant 0 : index
    %c0_16 = arith.constant 0 : index
    %c0_17 = arith.constant 0 : index
    %17 = vector.load %arg7[%c0_15, %c0_16, %c0_17] : memref<1x8x128xf32, #tpu.memory_space<vmem>>, vector<1x8x128xf32>
    %18 = vector.shape_cast %17 : vector<1x8x128xf32> to vector<8x128xf32>
    %19 = vector.shape_cast %16 : vector<8x128xf32> to vector<1x8x128xf32>
    tpu.vector_store %arg7[%c0_15, %c0_16, %c0_17], %19 {strides = array<i32>} : memref<1x8x128xf32, #tpu.memory_space<vmem>>, vector<1x8x128xf32>,
    return
  }
  func.func @transform_0(%arg0: i32, %arg1: i32) -> (i32, i32) {
    %c0_i32 = arith.constant 0 : i32
    %c0_i32_0 = arith.constant 0 : i32
    return %arg1, %c0_i32 : i32, i32
  }
  func.func @transform_1(%arg0: i32, %arg1: i32) -> (i32, i32, i32) {
    %c0_i32 = arith.constant 0 : i32
    %c0_i32_0 = arith.constant 0 : i32
    %c0_i32_1 = arith.constant 0 : i32
    return %arg0, %c0_i32, %c0_i32_0 : i32, i32, i32
  }
  func.func @transform_2(%arg0: i32, %arg1: i32) -> (i32, i32, i32) {
    %c0_i32 = arith.constant 0 : i32
    %c0_i32_0 = arith.constant 0 : i32
    %c0_i32_1 = arith.constant 0 : i32
    return %arg0, %c0_i32, %c0_i32_0 : i32, i32, i32
  }
  func.func @transform_3(%arg0: i32, %arg1: i32) -> (i32, i32, i32) {
    %c0_i32 = arith.constant 0 : i32
    %c0_i32_0 = arith.constant 0 : i32
    %c0_i32_1 = arith.constant 0 : i32
    return %arg0, %c0_i32, %c0_i32_0 : i32, i32, i32
  }
  func.func @transform_4(%arg0: i32, %arg1: i32) -> (i32, i32, i32) {
    %c0_i32 = arith.constant 0 : i32
    %c0_i32_0 = arith.constant 0 : i32
    %c0_i32_1 = arith.constant 0 : i32
    return %arg0, %c0_i32, %c0_i32_0 : i32, i32, i32
  }
  func.func @transform_5(%arg0: i32, %arg1: i32) -> (i32, i32, i32) {
    %c0_i32 = arith.constant 0 : i32
    %c0_i32_0 = arith.constant 0 : i32
    return %arg0, %arg1, %c0_i32 : i32, i32, i32
  }
}

</mosaic_0001>

<bundles_post_ra>
// kernel: tpu_custom_call.1
= control target key start
LH: loop header
LB: loop body
LE: loop exit
PB: predicated region body
PF: predicated region fallthrough
CT: control target
= control target key end

     0   :  { %6 = vsyncpa [#allocation3], 0  ;;  %s499_s0 = inlined_call_operand.hbm [shape: f32[16,128], index: 0, kind: input, shape index: {}]   ;;  %s500_s1 = inlined_call_operand.hbm [shape: f32[16,128], index: 1, kind: output, shape index: {}]  }
   0x1   :  { %7 = vsyncpa [#allocation4], 0 }
   0x2   :  { %9 = vsyncpa [#allocation4 + $0x1], 0  ;;  %s358_s6 = smov 0   ;;  %s360_s7 = smov 0  }
   0x3   :  { %s362_s8 = smov 0   ;;  %s364_s9 = smov 0  }
   0x4 LB: > { %s379_s10 = sadd.s32 4294967295, %s344_s9   ;;  %s193_s11 = sadd.s32 4294967294, %s344_s9   ;;  %s344_s9 = sphi %s364_s9, %s517_s9   ;;  %s340_s8 = sphi %s362_s8, %s516_s8   ;;  %s336_s7 = sphi %s360_s7, %s515_s7   ;;  %s332_s6 = sphi %s358_s6, %s514_s6  }
   0x5   : > { %s383_s12 = sadd.s32 1, %s344_s9   ;;  %s22_s13 = sadd.s32 1, %s340_s8 }
   0x6   : > { %s19_s14 = ssub.s32 %s344_s9, %s383_s12  ;;  %p35_p0 = scmp.ne.s32.totalorder %s336_s7, %s332_s6 }
   0x7   : > { %p20_p1 = scmp.eq.s32.totalorder %s19_s14, 0  ;;  %p36_p2 = scmp.eq.s32.totalorder %s379_s10, 0 }
   0x8   : > { %p58_p3 = scmp.ne.s32.totalorder %s340_s8, %s336_s7  ;;  %p59_p4 = scmp.eq.s32.totalorder %s379_s10, 1 }
   0x9   : > { %s395_s15 = scalar_select %p20_p1, %s340_s8, %s22_s13  }
   0xa   : > { %p397_p5 = por %p59_p4, %p58_p3  ;;  %p65_p6 = scmp.eq.s32.totalorder %s193_s11, 1 }
   0xb   : > { %p194_p7 = scmp.ge.s32.totalorder %s344_s9, 1  ;;  %p402_p8 = por %p36_p2, %p35_p0 }
   0xc   : > { %s505_s16 = scalar_select %p397_p5, 1, 0 }
   0xd   : > { %s506_s17 = scalar_select %p402_p8, 1, 0 }
   0xe   : > { %p72_p9 = scmp.lt.s32.totalorder %s344_s9, 3  ;;  %p407_p10 = por %p65_p6, %p35_p0 }
   0xf   : > { %s195_s19 = sshll.u32 %s379_s10, 7  ;;  %s346_s21 = smov [#allocation2]  }
  0x10   : > { %s507_s18 = scalar_select %p407_p10, 1, 0 }
  0x11   : > { %p412_p11 = pnand %p194_p7, %p72_p9  ;;  %s87_s22 = sshll.u32 %s346_s21, 4  ;;  %s88_s22 = int_to_ptr.vmem [resolvable:$true] %s87_s22 }
  0x12   : > { %s85_s25 = scalar_lea.hbm %s499_s0, %s195_s19  ;;  %s253_s30 = scalar_lea.hbm %s499_s0, 256 }
  0x13   : > { %s508_s20 = scalar_select %p412_p11, 1, 0 }
  0x14   : > { %p206_p12 = pneg %p412_p11  ;;  %s248_s27 = scalar_lea.hbm %s85_s25, 128 }
  0x15   : > { %p249_p0 = scmp.ne.s32.totalorder %s85_s25, %s248_s27  ;;  %p254_p4 = scmp.lt.u32.totalorder %s85_s25, %s499_s0 }
  0x16   : > { %p425_p13 = pnand %p206_p12, %p402_p8  ;;  %p255_p6 = scmp.lt.u32.totalorder %s253_s30, %s248_s27 }
  0x17   : > { %p257_p9 = scmp.lt.u32.totalorder %s248_s27, %s85_s25 }
  0x18   : > { %p250_p1 = pneg %p425_p13  ;;  %p256_p7 = por %p255_p6, %p254_p4 }
  0x1a   : > { %p251_p2 = pnand %p250_p1, %p249_p0  ;;  %p258_p12 = por %p257_p9, %p256_p7 }
  0x1c   : > { %p252_p3 = pneg %p251_p2 }
  0x1e   : > { %p259_p10 = pnand %p258_p12, %p252_p3 }
  0x20   : > { %262 = shalt.err (!%p259_p10)
}
  0x21   : > { %s263_s4 = scalar_lea.vmem %s88_s22, 128  ;;  %p271_p8 = scmp.lt.s32.totalorder %s88_s22, %s88_s22 }
  0x22   : > { %p264_p5 = scmp.ne.s32.totalorder %s88_s22, %s263_s4  ;;  %p272_p11 = scmp.lt.s32.totalorder %s263_s4, %s263_s4 }
  0x24   : > { %p266_p0 = pnand %p264_p5, %p250_p1  ;;  %p273_p4 = por %p272_p11, %p271_p8 }
  0x26   : > { %p267_p2 = pneg %p266_p0 }
  0x28   : > { %p274_p6 = pnand %p273_p4, %p267_p2 }
  0x2a   : > { %277 = shalt.err (!%p274_p6)
}
  0x2b   : > { %209 = dma.hbm_to_vmem [thread:$0]  (!%p425_p13), %s85_s25, 128, %s88_s22, [#allocation3]  }
  0x2c   : > { %p510_p7 = scmp.ne.s32.totalorder %s508_s20, 0 }
  0x2d   : > { %p511_p10 = scmp.ne.s32.totalorder (!%p510_p7), %s506_s17, 0 }
  0x2e   : > { %100 = sbr.rel (%p510_p7) target bundleno = 80 (0x50), region = 24 }
  0x35   : > { %323 = dma.done.wait (%p511_p10), [#allocation3], 128  }
  0x36   : > { %325 = vsyncadd (%p511_p10), [#allocation3], 4294967168  ;;  %s112_s5 = sand.u32 1, %s336_s7   ;;  %v115_v0 = vld [vmem:[#allocation2] sm:$0xff]  ;;  %s457_s20 = scalar_lea.hbm %s500_s1, %s195_s19 }
  0x37   : > { %s197_s11 = sshll.u32 %s112_s5, 3  ;;  %v116_v1 = vadd.f32 1.0, %v115_v0  ;;  %s119_s17 = scalar_lea.sflag [#allocation4], %s112_s5 }
  0x38   : > { %s114_s13 = scalar_lea.vmem [#allocation5], %s197_s11  ;;  %p512_p8 = scmp.ne.s32.totalorder %s505_s16, 0 }
  0x39   : > { %s132_s14 = sshll.u32 %s114_s13, 4  ;;  %117 = vst [vmem:[%s114_s13] sm:$0xff] %v116_v1  ;;  %s347_s24 = smov [#allocation5]   ;;  %s459_s14 = int_to_ptr.vmem [resolvable:$true] %s132_s14 }
  0x3a   : > { %s278_s23 = scalar_lea.vmem %s459_s14, 128  ;;  %s282_s10 = sshll.u32 %s347_s24, 4  ;;  %s283_s10 = int_to_ptr.vmem [resolvable:$false] %s282_s10 }
  0x3b   : > { %p279_p5 = scmp.ne.s32.totalorder %s459_s14, %s278_s23  ;;  %s284_s25 = scalar_lea.vmem %s283_s10, 256 }
  0x3c   : > { %p285_p1 = scmp.lt.s32.totalorder %s459_s14, %s283_s10  ;;  %p286_p3 = scmp.lt.s32.totalorder %s284_s25, %s278_s23 }
  0x3d   : > { %p280_p11 = pnand %p279_p5, %p512_p8 }
  0x3e   : > { %p287_p9 = por %p286_p3, %p285_p1 }
  0x3f   : > { %p281_p13 = pneg %p280_p11 }
  0x41   : > { %p288_p12 = pnand %p287_p9, %p281_p13 }
  0x43   : > { %291 = shalt.err (!%p288_p12)
}
  0x44   : > { %s292_s19 = scalar_lea.hbm %s457_s20, 128  ;;  %s296_s28 = scalar_lea.hbm %s500_s1, 256 }
  0x45   : > { %p293_p0 = scmp.ne.s32.totalorder %s457_s20, %s292_s19  ;;  %p297_p6 = scmp.lt.u32.totalorder %s457_s20, %s500_s1 }
  0x46   : > { %p298_p7 = scmp.lt.u32.totalorder %s296_s28, %s292_s19  ;;  %p300_p5 = scmp.lt.u32.totalorder %s292_s19, %s457_s20 }
  0x47   : > { %p294_p2 = pnand %p293_p0, %p512_p8 }
  0x48   : > { %p299_p10 = por %p298_p7, %p297_p6 }
  0x49   : > { %p295_p4 = pneg %p294_p2 }
  0x4a   : > { %p301_p11 = por %p300_p5, %p299_p10 }
  0x4c   : > { %p302_p13 = pnand %p301_p11, %p295_p4 }
  0x4e   : > { %305 = shalt.err (!%p302_p13)
}
  0x4f   : > { %204 = dma.vmem_to_hbm [thread:$0]  (%p512_p8), %s459_s14, 128, %s457_s20, %s119_s17  }
  0x50 PF: > { %p214_p1 = scmp.ge.s32.totalorder %s344_s9, 2  ;;  %s144_s2 = sand.u32 1, %s332_s6  }
  0x51   : > { %p513_p3 = scmp.ne.s32.totalorder %s507_s18, 0  ;;  %s145_s3 = scalar_lea.sflag [#allocation4], %s144_s2 }
  0x53   : > { %p211_p9 = pnand %p214_p1, %p513_p3 }
  0x55   : > { %327 = dma.done.wait (!%p211_p9), %s145_s3, 128  }
  0x56   : > { %329 = vsyncadd (!%p211_p9), %s145_s3, 4294967168  ;;  %p12_p12 = scmp.ge.s32.totalorder %s383_s12, 4   ;;  %s514_s6 = smov %s336_s7 }
  0x57   : > { %s515_s7 = smov %s340_s8  ;;  %s516_s8 = smov %s395_s15 }
  0x58   : > { %s517_s9 = smov %s383_s12  ;;  %14 = sbr.rel (!%p12_p12) target bundleno = 4 (0x4), region = 62 }
  0x5f   :  { %150 = vsyncpa [#allocation3], 1 }
  0x60   :  { %152 = vsyncpa [#allocation3 + $0x1], 1 }
  0x61   :  { %153 = vsyncpa [#allocation4], 1 }
  0x62   :  { %155 = vsyncpa [#allocation4 + $0x1], 1 }

// kernel: fn.1
= control target key start
LH: loop header
LB: loop body
LE: loop exit
PB: predicated region body
PF: predicated region fallthrough
CT: control target
= control target key end

     0   :  { %10 = vsyncpa [#allocation3], 0  ;;  %s541_s0 = inlined_call_operand.vmem [shape: f32[8,128], index: 0, kind: input, shape index: {}]   ;;  %s542_s1 = inlined_call_operand.hbm [shape: f32[1,128,128], index: 1, kind: input, shape index: {}]   ;;  %s543_s2 = inlined_call_operand.vmem [shape: f32[1,1,128], index: 2, kind: input, shape index: {}]   ;;  %s544_s3 = inlined_call_operand.hbm [shape: f32[1,128,128], index: 3, kind: input, shape index: {}]   ;;  %s545_s4 = inlined_call_operand.vmem [shape: f32[1,1,128], index: 4, kind: input, shape index: {}]   ;;  %s546_s5 = inlined_call_operand.vmem [shape: f32[1,8,128], index: 5, kind: output, shape index: {}]  }
   0x1   :  { %11 = vsyncpa [#allocation5], 0  ;;  %s452_s18 = smov [#allocation2]   ;;  %s404_s22 = scalar_lea.hbm %s542_s1, 2048 }
   0x2   :  { %s19_s19 = sshll.u32 %s452_s18, 4  ;;  %p405_p0 = scmp.ne.s32.totalorder %s542_s1, %s404_s22  ;;  %s20_s19 = int_to_ptr.vmem [resolvable:$true] %s19_s19 }
   0x3   :  { %p408_p1 = scmp.lt.u32.totalorder %s404_s22, %s542_s1 }
   0x5   :  { %p410_p2 = pnand %p408_p1, %p405_p0 }
   0x7   :  { %413 = shalt.err (!%p410_p2)
}
   0x8   :  { %s414_s27 = scalar_lea.vmem %s20_s19, 2048  ;;  %p419_p4 = scmp.lt.s32.totalorder %s20_s19, %s20_s19 }
   0x9   :  { %p415_p3 = scmp.ne.s32.totalorder %s20_s19, %s414_s27  ;;  %p420_p5 = scmp.lt.s32.totalorder %s414_s27, %s414_s27 }
   0xb   :  { %p421_p6 = por %p420_p5, %p419_p4 }
   0xd   :  { %p422_p7 = pnand %p421_p6, %p415_p3 }
   0xf   :  { %425 = shalt.err (!%p422_p7)
}
  0x10   :  { %s453_s28 = smov 128   ;;  %s454_s29 = smov 8  }
  0x11   :  { %25 = dma.hbm_to_vmem [thread:$0]  %s542_s1, 2048, %s20_s19, [#allocation3], %s453_s28, %s453_s28, %s454_s29  }
  0x12   :  { %s455_s7 = smov [#allocation4]   ;;  %s426_s11 = scalar_lea.hbm %s544_s3, 2048 }
  0x13   :  { %s33_s8 = sshll.u32 %s455_s7, 4  ;;  %p427_p8 = scmp.ne.s32.totalorder %s544_s3, %s426_s11  ;;  %s34_s8 = int_to_ptr.vmem [resolvable:$true] %s33_s8 }
  0x14   :  { %p430_p9 = scmp.lt.u32.totalorder %s426_s11, %s544_s3 }
  0x16   :  { %p432_p10 = pnand %p430_p9, %p427_p8 }
  0x18   :  { %435 = shalt.err (!%p432_p10)
}
  0x19   :  { %s436_s16 = scalar_lea.vmem %s34_s8, 2048  ;;  %p441_p12 = scmp.lt.s32.totalorder %s34_s8, %s34_s8 }
  0x1a   :  { %p437_p11 = scmp.ne.s32.totalorder %s34_s8, %s436_s16  ;;  %p442_p13 = scmp.lt.s32.totalorder %s436_s16, %s436_s16 }
  0x1c   :  { %p443_p0 = por %p442_p13, %p441_p12 }
  0x1e   :  { %p444_p1 = pnand %p443_p0, %p437_p11 }
  0x20   :  { %447 = shalt.err (!%p444_p1)
}
  0x21   :  { %39 = dma.hbm_to_vmem [thread:$0]  %s544_s3, 2048, %s34_s8, [#allocation5], %s453_s28, %s453_s28, %s454_s29  }
  0x22   :  { %448 = dma.done.wait [#allocation3], 2048  }
  0x23   :  { %449 = vsyncadd [#allocation3], 4294965248 }
  0x24   :  { %450 = dma.done.wait [#allocation5], 2048  }
  0x25   :  { %451 = vsyncadd [#allocation5], 4294965248  ;;  %v456_v0 = vmov 0.0|0.0   ;;  %vm457_vm0 = vmmov 0   ;;  %v458_v1 = vmov 0.0   ;;  %v49_v2 = vld [vmem:[#allocation2] sm:$0xff] }
  0x26   :  { %349 = vmatprep.subr.bf16.mxu0 %v456_v0  ;;  %311 = vmatprep.mubr.msk.f32.mxu0 %vm457_vm0, %v458_v1  ;;  %v50_v3 = vld [vmem:[#allocation2 + $0x8] sm:$0xff]  ;;  %v51_v4 = vld [vmem:[#allocation2 + $0x10] sm:$0xff]  ;;  %v52_v6 = vld [vmem:[#allocation2 + $0x18] sm:$0xff] }
  0x27   :  { %373 = vmatprep.subr.bf16.mxu1 %v456_v0  ;;  %346 = vmatprep.mubr.msk.f32.mxu1 %vm457_vm0, %v458_v1  ;;  %v350_v5 = vpack.c.bf16 %v50_v3, %v49_v2  ;;  %v353_v7 = vpack.c.bf16 %v52_v6, %v51_v4  ;;  %v53_v8 = vld [vmem:[#allocation2 + $0x20] sm:$0xff]  ;;  %v54_v9 = vld [vmem:[#allocation2 + $0x28] sm:$0xff]  ;;  %v145_v12 = vld [vmem:[#allocation4 + $0x10] sm:$0xff] }
  0x28   :  { %v143_v10 = vld [vmem:[#allocation4] sm:$0xff]  ;;  %v144_v11 = vld [vmem:[#allocation4 + $0x8] sm:$0xff]  ;;  %v146_v13 = vld [vmem:[#allocation4 + $0x18] sm:$0xff]  ;;  %v356_v14 = vpack.c.bf16 %v54_v9, %v53_v8 }
  0x29   :  { %351 = vmatpush3.bf16.msra.mxu0 %v350_v5  ;;  %v374_v15 = vpack.c.bf16 %v144_v11, %v143_v10  ;;  %v55_v16 = vld [vmem:[#allocation2 + $0x30] sm:$0xff]  ;;  %v56_v17 = vld [vmem:[#allocation2 + $0x38] sm:$0xff]  ;;  %v377_v18 = vpack.c.bf16 %v146_v13, %v145_v12  ;;  %v147_v19 = vld [vmem:[#allocation4 + $0x20] sm:$0xff] }
  0x2a   :  { %352 = vmatprep.subr.bf16.mxu0 %v456_v0  ;;  %v148_v20 = vld [vmem:[#allocation4 + $0x28] sm:$0xff]  ;;  %v359_v21 = vpack.c.bf16 %v56_v17, %v55_v16  ;;  %v57_v22 = vld [vmem:[#allocation2 + $0x40] sm:$0xff]  ;;  %v149_v25 = vld [vmem:[#allocation4 + $0x30] sm:$0xff] }
  0x2b   :  { %375 = vmatpush3.bf16.msra.mxu1 %v374_v15  ;;  %v58_v23 = vld [vmem:[#allocation2 + $0x48] sm:$0xff]  ;;  %v380_v24 = vpack.c.bf16 %v148_v20, %v147_v19  ;;  %v150_v26 = vld [vmem:[#allocation4 + $0x38] sm:$0xff]  ;;  %v59_v28 = vld [vmem:[#allocation2 + $0x50] sm:$0xff] }
  0x2c   :  { %376 = vmatprep.subr.bf16.mxu1 %v456_v0  ;;  %v362_v27 = vpack.c.bf16 %v58_v23, %v57_v22  ;;  %v60_v29 = vld [vmem:[#allocation2 + $0x58] sm:$0xff]  ;;  %v383_v30 = vpack.c.bf16 %v150_v26, %v149_v25  ;;  %v151_v31 = vld [vmem:[#allocation4 + $0x40] sm:$0xff]  ;;  %v152_v32 = vld [vmem:[#allocation4 + $0x48] sm:$0xff] }
  0x2d   :  { %354 = vmatpush3.bf16.msra.mxu0 %v353_v7  ;;  %v365_v33 = vpack.c.bf16 %v60_v29, %v59_v28  ;;  %v61_v34 = vld [vmem:[#allocation2 + $0x60] sm:$0xff]  ;;  %v62_v35 = vld [vmem:[#allocation2 + $0x68] sm:$0xff]  ;;  %v386_v36 = vpack.c.bf16 %v152_v32, %v151_v31  ;;  %v153_v37 = vld [vmem:[#allocation4 + $0x50] sm:$0xff] }
  0x2e   :  { %355 = vmatprep.subr.bf16.mxu0 %v456_v0  ;;  %v154_v38 = vld [vmem:[#allocation4 + $0x58] sm:$0xff]  ;;  %v368_v39 = vpack.c.bf16 %v62_v35, %v61_v34  ;;  %v63_v40 = vld [vmem:[#allocation2 + $0x70] sm:$0xff]  ;;  %v155_v43 = vld [vmem:[#allocation4 + $0x60] sm:$0xff] }
  0x2f   :  { %378 = vmatpush3.bf16.msra.mxu1 %v377_v18  ;;  %v64_v41 = vld [vmem:[#allocation2 + $0x78] sm:$0xff]  ;;  %v389_v42 = vpack.c.bf16 %v154_v38, %v153_v37  ;;  %v156_v44 = vld [vmem:[#allocation4 + $0x68] sm:$0xff]  ;;  %v48_v47 = vld [vmem:[%s541_s0] sm:$0xff] }
  0x30   :  { %379 = vmatprep.subr.bf16.mxu1 %v456_v0  ;;  %v371_v45 = vpack.c.bf16 %v64_v41, %v63_v40  ;;  %v392_v46 = vpack.c.bf16 %v156_v44, %v155_v43  ;;  %v157_v48 = vld [vmem:[#allocation4 + $0x70] sm:$0xff]  ;;  %v158_v49 = vld [vmem:[#allocation4 + $0x78] sm:$0xff]  ;;  %v243_v51 = vld [vmem:[%s543_s2] ss:$0 sm:$0xff] }
  0x31   :  { %357 = vmatpush3.bf16.msra.mxu0 %v356_v14  ;;  %v395_v50 = vpack.c.bf16 %v158_v49, %v157_v48  ;;  %v244_v56 = vld [vmem:[%s545_s4] ss:$0 sm:$0xff] }
  0x32   :  { %358 = vmatprep.subr.bf16.mxu0 %v456_v0 }
  0x33   :  { %381 = vmatpush3.bf16.msra.mxu1 %v380_v24 }
  0x34   :  { %382 = vmatprep.subr.bf16.mxu1 %v456_v0 }
  0x35   :  { %360 = vmatpush3.bf16.msra.mxu0 %v359_v21 }
  0x36   :  { %361 = vmatprep.subr.bf16.mxu0 %v456_v0 }
  0x37   :  { %384 = vmatpush3.bf16.msra.mxu1 %v383_v30 }
  0x38   :  { %385 = vmatprep.subr.bf16.mxu1 %v456_v0 }
  0x39   :  { %363 = vmatpush3.bf16.msra.mxu0 %v362_v27 }
  0x3a   :  { %364 = vmatprep.subr.bf16.mxu0 %v456_v0 }
  0x3b   :  { %387 = vmatpush3.bf16.msra.mxu1 %v386_v36 }
  0x3c   :  { %388 = vmatprep.subr.bf16.mxu1 %v456_v0 }
  0x3d   :  { %366 = vmatpush3.bf16.msra.mxu0 %v365_v33 }
  0x3e   :  { %367 = vmatprep.subr.bf16.mxu0 %v456_v0 }
  0x3f   :  { %390 = vmatpush3.bf16.msra.mxu1 %v389_v42 }
  0x40   :  { %391 = vmatprep.subr.bf16.mxu1 %v456_v0 }
  0x41   :  { %369 = vmatpush3.bf16.msra.mxu0 %v368_v39 }
  0x42   :  { %370 = vmatprep.subr.bf16.mxu0 %v456_v0 }
  0x43   :  { %393 = vmatpush3.bf16.msra.mxu1 %v392_v46 }
  0x44   :  { %394 = vmatprep.subr.bf16.mxu1 %v456_v0 }
  0x45   :  { %372 = vmatpush3.bf16.msra.mxu0 %v371_v45 }
  0x47   :  { %396 = vmatpush3.bf16.msra.mxu1 %v395_v50 }
  0x48   :  { %312 = vmatmul.mubr.f32.vlgmr.msra.gmra.mrb[0].mxu0 %v48_v47 }
 0x11b   :  { %v138_v52 = vpop.f32.mrb[0].mxu0 }
 0x11c   :  { %v139_v53 = vadd.f32 %v243_v51, %v138_v52  ;;  %v313_v54 = vpop.f32.mrb[1].mxu0 }
 0x11e   :  { %v142_v55 = vmax.f32 %v139_v53, 0.0 }
 0x120   :  { %347 = vmatmul.mubr.f32.vlgmr.msra.gmra.mrb[0].mxu1 %v142_v55 }
 0x1f3   :  { %v232_v57 = vpop.f32.mrb[0].mxu1 }
 0x1f4   :  { %v233_v58 = vadd.f32 %v244_v56, %v232_v57  ;;  %v348_v59 = vpop.f32.mrb[1].mxu1 }
 0x1f6   :  { %236 = vst [vmem:[%s546_s5] sm:$0xff] %v233_v58 }
 0x1f7   :  { %241 = vsyncpa [#allocation3], 1 }
 0x1f8   :  { %242 = vsyncpa [#allocation5], 1 }

</bundles_post_ra>
